<compile_context>
chip_gen: v6e
topology: v6e:2x2x1
jax: 0.10.0
libtpu: 0.0.40
codegen_flags: <defaults>
</compile_context>

<pallas_src>
import jax
import jax.numpy as jnp
from jax.experimental import pallas as pl
from jax.experimental.pallas import tpu as pltpu


def make_decoder_kernel(C, N, K, L):
    assert L % 2 == 0, "overlap_and_add with frame_step = L // 2 requires even L"
    hop = L // 2

    def decoder_kernel(mix_ref, mask_ref, w_ref, o_ref):
        # mix_ref:  [1, N, K]        mixture_w for this batch element
        # mask_ref: [1, C, N, K]     est_mask  for this batch element
        # w_ref:    [N, L]           basis_signals weight (transposed vs PyTorch [L, N])
        # o_ref:    [1, C, K+1, hop] output subframes (reshaped to [C, T] outside)
        mix = mix_ref[0]                                      # [N, K]

        # --- mask + transpose: build [C*K, N] rows (lane dim = N, MXU ready) ---
        rows = []
        for c in range(C):                                    # static unroll (small C)
            src_c = mask_ref[0, c] * mix                      # [N, K]
            rows.append(jnp.transpose(src_c, (1, 0)))         # [K, N]
        rows = jnp.concatenate(rows, axis=0)                  # [C*K, N]

        # --- basis signals: one MXU matmul for all sources / frames ---
        est = jnp.dot(rows, w_ref[...],
                      preferred_element_type=jnp.float32)     # [C*K, L]

        # --- overlap-and-add (hop = L//2):
        #     out_sub[s] = first_half[frame s] + second_half[frame s-1] ---
        zero = jnp.zeros((1, hop), jnp.float32)
        for c in range(C):                                    # static unroll
            e = est[c * K:(c + 1) * K, :]                     # [K, L]
            first = e[:, :hop]                                # [K, hop]
            second = e[:, hop:]                               # [K, hop]
            out_c = (jnp.concatenate([first, zero], axis=0)
                     + jnp.concatenate([zero, second], axis=0))  # [K+1, hop]
            o_ref[0, c] = out_c

    return decoder_kernel


def decoder_forward(mixture_w, est_mask, w_nl):
    """mixture_w [M,N,K], est_mask [M,C,N,K], w_nl [N,L] -> est_source [M,C,T]."""
    M, N, K = mixture_w.shape
    C = est_mask.shape[1]
    L = w_nl.shape[1]
    hop = L // 2
    T = (K - 1) * hop + L                                     # == (K + 1) * hop

    kernel = make_decoder_kernel(C, N, K, L)
    out = pl.pallas_call(
        kernel,
        out_shape=jax.ShapeDtypeStruct((M, C, K + 1, hop), jnp.float32),
        grid=(M,),
        in_specs=[
            pl.BlockSpec((1, N, K), lambda m: (m, 0, 0)),
            pl.BlockSpec((1, C, N, K), lambda m: (m, 0, 0, 0)),
            pl.BlockSpec((N, L), lambda m: (0, 0)),           # weight resident across grid
        ],
        out_specs=pl.BlockSpec((1, C, K + 1, hop), lambda m: (m, 0, 0, 0)),
        compiler_params=pltpu.CompilerParams(
            dimension_semantics=("parallel",)),               # 2x on v7x's 2 TCs
    )(mixture_w, est_mask, w_nl)
    # Free reshape: merges the contiguous trailing (K+1, hop) dims into T.
    return out.reshape(M, C, T)


# ------------------------------------------------------------------------------
# Pure-JAX reference (mirrors the PyTorch Decoder + overlap_and_add exactly)
# ------------------------------------------------------------------------------
def ref_decoder(mixture_w, est_mask, w_nl):
    M, N, K = mixture_w.shape
    C = est_mask.shape[1]
    L = w_nl.shape[1]
    hop = L // 2
    T = (K - 1) * hop + L
    src = mixture_w[:, None, :, :] * est_mask                 # [M, C, N, K]
    src = jnp.transpose(src, (0, 1, 3, 2))                    # [M, C, K, N]
    est = src @ w_nl                                          # [M, C, K, L]
    out = jnp.zeros((M, C, T), jnp.float32)
    for k in range(K):                                        # overlap_and_add
        out = out.at[:, :, k * hop:k * hop + L].add(est[:, :, k, :])
    return out


# ------------------------------------------------------------------------------
if __name__ == "__main__":
    # Small but lane-dense shapes: N = 128 encoder channels (matmul contraction
    # dim fills the 128-lane vreg), K = 32 frames, L = 16 basis length,
    # C = 2 sources, M = 2 batch.
    M, C, N, K, L = 2, 2, 128, 32, 16

    key = jax.random.PRNGKey(0)
    k_mix, k_mask, k_w = jax.random.split(key, 3)
    mixture_w = jax.random.normal(k_mix, (M, N, K), dtype=jnp.float32)
    est_mask = jax.nn.relu(jax.random.normal(k_mask, (M, C, N, K), dtype=jnp.float32))
    # PyTorch Linear(N, L, bias=False).weight has shape [L, N]; the kernel takes W.T.
    w_nl = 0.1 * jax.random.normal(k_w, (N, L), dtype=jnp.float32)

    est_source = decoder_forward(mixture_w, est_mask, w_nl)
    est_source = jax.block_until_ready(est_source)
    T = (K - 1) * (L // 2) + L
    assert est_source.shape == (M, C, T), est_source.shape

    ref = jax.block_until_ready(ref_decoder(mixture_w, est_mask, w_nl))
    err = float(jnp.max(jnp.abs(est_source - ref)))
    assert err < 1e-4, f"mismatch vs reference: {err}"

    print("KERNEL_OK")
</pallas_src>

<mosaic_0001>
module attributes {stable_mosaic.version = 11 : i64} {
  func.func @decoder_kernel(%arg0: i32, %arg1: memref<1x128x32xf32, #tpu.memory_space<vmem>>, %arg2: memref<1x2x128x32xf32, #tpu.memory_space<vmem>>, %arg3: memref<128x16xf32, #tpu.memory_space<vmem>>, %arg4: memref<1x2x33x8xf32, #tpu.memory_space<vmem>>) attributes {dimension_semantics = [#tpu.dimension_semantics<parallel>], iteration_bounds = array<i64: 2>, scalar_prefetch = 0 : i64, scratch_operands = 0 : i64, tpu.core_type = #tpu.core_type<tc>, window_params = [{transform_indices = @transform_0, window_bounds = array<i64: 1, 128, 32>}, {transform_indices = @transform_1, window_bounds = array<i64: 1, 2, 128, 32>}, {pipeline_mode = #tpu.pipeline_mode<synchronous>, transform_indices = @transform_2, window_bounds = array<i64: 128, 16>}, {transform_indices = @transform_3, window_bounds = array<i64: 1, 2, 33, 8>}]} {
    %c0 = arith.constant 0 : index
    %c0_0 = arith.constant 0 : index
    %c0_1 = arith.constant 0 : index
    %0 = vector.load %arg1[%c0, %c0_0, %c0_1] : memref<1x128x32xf32, #tpu.memory_space<vmem>>, vector<1x128x32xf32>
    %1 = vector.shape_cast %0 : vector<1x128x32xf32> to vector<128x32xf32>
    %c0_2 = arith.constant 0 : index
    %c0_3 = arith.constant 0 : index
    %c0_4 = arith.constant 0 : index
    %c0_5 = arith.constant 0 : index
    %2 = vector.load %arg2[%c0_2, %c0_3, %c0_4, %c0_5] : memref<1x2x128x32xf32, #tpu.memory_space<vmem>>, vector<1x1x128x32xf32>
    %3 = vector.shape_cast %2 : vector<1x1x128x32xf32> to vector<128x32xf32>
    %4 = arith.mulf %3, %1 : vector<128x32xf32>
    %5 = tpu.transpose %4, [1, 0] : vector<128x32xf32> -> vector<32x128xf32>
    %c0_6 = arith.constant 0 : index
    %c1 = arith.constant 1 : index
    %c0_7 = arith.constant 0 : index
    %c0_8 = arith.constant 0 : index
    %6 = vector.load %arg2[%c0_6, %c1, %c0_7, %c0_8] : memref<1x2x128x32xf32, #tpu.memory_space<vmem>>, vector<1x1x128x32xf32>
    %7 = vector.shape_cast %6 : vector<1x1x128x32xf32> to vector<128x32xf32>
    %8 = arith.mulf %7, %1 : vector<128x32xf32>
    %9 = tpu.transpose %8, [1, 0] : vector<128x32xf32> -> vector<32x128xf32>
    %10 = tpu.concatenate %5, %9 in 0 : vector<32x128xf32>, vector<32x128xf32> -> vector<64x128xf32>
    %c0_9 = arith.constant 0 : index
    %c0_10 = arith.constant 0 : index
    %11 = vector.load %arg3[%c0_9, %c0_10] : memref<128x16xf32, #tpu.memory_space<vmem>>, vector<128x16xf32>
    %cst = arith.constant dense<0.000000e+00> : vector<64x16xf32>
    %12 = tpu.matmul %10, %11, %cst {dimension_numbers = #tpu.dot_dimension_numbers<[1], [0], [0], [1], [0, 0, 1, 1], [], []>} : vector<64x128xf32>, vector<128x16xf32>, vector<64x16xf32> -> vector<64x16xf32>
    %cst_11 = arith.constant 0.000000e+00 : f32
    %13 = vector.broadcast %cst_11 : f32 to vector<1x8xf32>
    %14 = vector.extract_strided_slice %12 {offsets = [0, 0], sizes = [32, 16], strides = [1, 1]} : vector<64x16xf32> to vector<32x16xf32>
    %15 = vector.extract_strided_slice %14 {offsets = [0, 0], sizes = [32, 8], strides = [1, 1]} : vector<32x16xf32> to vector<32x8xf32>
    %16 = vector.extract_strided_slice %14 {offsets = [0, 8], sizes = [32, 8], strides = [1, 1]} : vector<32x16xf32> to vector<32x8xf32>
    %17 = tpu.concatenate %15, %13 in 0 : vector<32x8xf32>, vector<1x8xf32> -> vector<33x8xf32>
    %18 = tpu.concatenate %13, %16 in 0 : vector<1x8xf32>, vector<32x8xf32> -> vector<33x8xf32>
    %19 = arith.addf %17, %18 : vector<33x8xf32>
    %c0_12 = arith.constant 0 : index
    %c0_13 = arith.constant 0 : index
    %c0_14 = arith.constant 0 : index
    %c0_15 = arith.constant 0 : index
    %20 = vector.load %arg4[%c0_12, %c0_13, %c0_14, %c0_15] : memref<1x2x33x8xf32, #tpu.memory_space<vmem>>, vector<1x1x33x8xf32>
    %21 = vector.shape_cast %20 : vector<1x1x33x8xf32> to vector<33x8xf32>
    %22 = vector.shape_cast %19 : vector<33x8xf32> to vector<1x1x33x8xf32>
    tpu.vector_store %arg4[%c0_12, %c0_13, %c0_14, %c0_15], %22 {strides = array<i32>} : memref<1x2x33x8xf32, #tpu.memory_space<vmem>>, vector<1x1x33x8xf32>,
    %23 = vector.extract_strided_slice %12 {offsets = [32, 0], sizes = [32, 16], strides = [1, 1]} : vector<64x16xf32> to vector<32x16xf32>
    %24 = vector.extract_strided_slice %23 {offsets = [0, 0], sizes = [32, 8], strides = [1, 1]} : vector<32x16xf32> to vector<32x8xf32>
    %25 = vector.extract_strided_slice %23 {offsets = [0, 8], sizes = [32, 8], strides = [1, 1]} : vector<32x16xf32> to vector<32x8xf32>
    %26 = tpu.concatenate %24, %13 in 0 : vector<32x8xf32>, vector<1x8xf32> -> vector<33x8xf32>
    %27 = tpu.concatenate %13, %25 in 0 : vector<1x8xf32>, vector<32x8xf32> -> vector<33x8xf32>
    %28 = arith.addf %26, %27 : vector<33x8xf32>
    %c0_16 = arith.constant 0 : index
    %c1_17 = arith.constant 1 : index
    %c0_18 = arith.constant 0 : index
    %c0_19 = arith.constant 0 : index
    %29 = vector.load %arg4[%c0_16, %c1_17, %c0_18, %c0_19] : memref<1x2x33x8xf32, #tpu.memory_space<vmem>>, vector<1x1x33x8xf32>
    %30 = vector.shape_cast %29 : vector<1x1x33x8xf32> to vector<33x8xf32>
    %31 = vector.shape_cast %28 : vector<33x8xf32> to vector<1x1x33x8xf32>
    tpu.vector_store %arg4[%c0_16, %c1_17, %c0_18, %c0_19], %31 {strides = array<i32>} : memref<1x2x33x8xf32, #tpu.memory_space<vmem>>, vector<1x1x33x8xf32>,
    return
  }
  func.func @transform_0(%arg0: i32) -> (i32, i32, i32) {
    %c0_i32 = arith.constant 0 : i32
    %c0_i32_0 = arith.constant 0 : i32
    %c0_i32_1 = arith.constant 0 : i32
    return %arg0, %c0_i32, %c0_i32_0 : i32, i32, i32
  }
  func.func @transform_1(%arg0: i32) -> (i32, i32, i32, i32) {
    %c0_i32 = arith.constant 0 : i32
    %c0_i32_0 = arith.constant 0 : i32
    %c0_i32_1 = arith.constant 0 : i32
    %c0_i32_2 = arith.constant 0 : i32
    return %arg0, %c0_i32, %c0_i32_0, %c0_i32_1 : i32, i32, i32, i32
  }
  func.func @transform_2(%arg0: i32) -> (i32, i32) {
    %c0_i32 = arith.constant 0 : i32
    %c0_i32_0 = arith.constant 0 : i32
    %c0_i32_1 = arith.constant 0 : i32
    return %c0_i32, %c0_i32_0 : i32, i32
  }
  func.func @transform_3(%arg0: i32) -> (i32, i32, i32, i32) {
    %c0_i32 = arith.constant 0 : i32
    %c0_i32_0 = arith.constant 0 : i32
    %c0_i32_1 = arith.constant 0 : i32
    %c0_i32_2 = arith.constant 0 : i32
    return %arg0, %c0_i32, %c0_i32_0, %c0_i32_1 : i32, i32, i32, i32
  }
}

</mosaic_0001>

<bundles_post_ra>
// kernel: tpu_custom_call.1
= control target key start
LH: loop header
LB: loop body
LE: loop exit
PB: predicated region body
PF: predicated region fallthrough
CT: control target
= control target key end

     0   :  { %s828_s12 = smov 0   ;;  %s983_s0 = inlined_call_operand.vmem [shape: f32[2,128,32], index: 0, kind: input, shape index: {}]   ;;  %s984_s1 = inlined_call_operand.vmem [shape: f32[2,2,128,32], index: 1, kind: input, shape index: {}]   ;;  %s985_s2 = inlined_call_operand.vmem [shape: f32[128,16], index: 2, kind: input, shape index: {}]   ;;  %s986_s3 = inlined_call_operand.vmem [shape: f32[2,2,33,8], index: 3, kind: output, shape index: {}]  }
   0x1 LB: > { %s602_s13 = sadd.s32 4294967295, %s805_s12   ;;  %p606_p0 = scmp.ge.s32.totalorder %s805_s12, 1  ;;  %s805_s12 = sphi %s828_s12, %s13_s12  }
   0x2   : > { %p147_p1 = scmp.lt.s32.totalorder %s805_s12, 3 }
   0x4   : > { %p148_p2 = pnand %p606_p0, %p147_p1 }
   0x5   : > { %p176_p3 = scmp.lt.s32.totalorder (!%p148_p2), %s602_s13, 1 }
   0x6   : > { %151 = sbr.rel (%p148_p2) target bundleno = 502 (0x1f6), region = 32 }
   0xb   : > { %v351_v0 = vld [vmem:[%s985_s2 + $0x78] sm:$0xff]  ;;  %v350_v1 = vld [vmem:[%s985_s2 + $0x70] sm:$0xff]  ;;  %s988_s13 = smov (!%p176_p3, %s602_s13), 1  ;;  %v349_v2 = vld [vmem:[%s985_s2 + $0x68] sm:$0xff]  ;;  %vm461_vm0 = vcmask 1040384   ;;  %vm490_vm1 = vcmask 64512  }
   0xc   : > { %661 = vmatprep.subr.mxu0 %v351_v0  ;;  %705 = vmatprep.subr.mxu1 %v351_v0  ;;  %s635_s20 = sshll.u32 %s988_s13, 7  ;;  %s636_s21 = sshll.u32 %s988_s13, 8  ;;  %v348_v3 = vld [vmem:[%s985_s2 + $0x60] sm:$0xff]  ;;  %v347_v4 = vld [vmem:[%s985_s2 + $0x58] sm:$0xff]  ;;  %v346_v8 = vld [vmem:[%s985_s2 + $0x50] sm:$0xff]  ;;  %vm495_vm2 = vcmask 57344  }
   0xd   : > { %662 = vmatpush3.msra.mxu0 %v351_v0  ;;  %721 = vmatpush3.msra.mxu1 %v351_v0  ;;  %s855_s26 = scalar_lea.vmem %s983_s0, %s635_s20  ;;  %s860_s29 = scalar_lea.vmem %s984_s1, %s636_s21  ;;  %v345_v20 = vld [vmem:[%s985_s2 + $0x48] sm:$0xff]  ;;  %v344_v27 = vld [vmem:[%s985_s2 + $0x40] sm:$0xff]  ;;  %v343_v31 = vld [vmem:[%s985_s2 + $0x38] sm:$0xff] }
   0xe   : > { %663 = vmatprep.subr.mxu0 %v350_v1  ;;  %706 = vmatprep.subr.mxu1 %v350_v1  ;;  %v191_v5 = vld [vmem:[%s855_s26] sm:$0xff]  ;;  %v192_v11 = vld [vmem:[%s855_s26 + $0x8] sm:$0xff]  ;;  %v193_v16 = vld [vmem:[%s855_s26 + $0x10] sm:$0xff] }
   0xf   : > { %664 = vmatpush3.msra.mxu0 %v350_v1  ;;  %722 = vmatpush3.msra.mxu1 %v350_v1  ;;  %v207_v6 = vld [vmem:[%s860_s29] sm:$0xff]  ;;  %v208_v12 = vld [vmem:[%s860_s29 + $0x8] sm:$0xff]  ;;  %v209_v17 = vld [vmem:[%s860_s29 + $0x10] sm:$0xff] }
  0x10   : > { %665 = vmatprep.subr.mxu0 %v349_v2  ;;  %707 = vmatprep.subr.mxu1 %v349_v2  ;;  %v612_v7 = vld [vmem:[%s860_s29 + $0x80] sm:$0xff]  ;;  %v223_v9 = vmul.f32 %v207_v6, %v191_v5  ;;  %v613_v13 = vld [vmem:[%s860_s29 + $0x88] sm:$0xff]  ;;  %v224_v14 = vmul.f32 %v208_v12, %v192_v11  ;;  %v614_v18 = vld [vmem:[%s860_s29 + $0x90] sm:$0xff]  ;;  %v225_v22 = vmul.f32 %v209_v17, %v193_v16 }
  0x11   : > { %666 = vmatpush3.msra.mxu0 %v349_v2  ;;  %723 = vmatpush3.msra.mxu1 %v349_v2  ;;  %v288_v10 = vmul.f32 %v612_v7, %v191_v5  ;;  %v289_v15 = vmul.f32 %v613_v13, %v192_v11  ;;  %v290_v23 = vmul.f32 %v614_v18, %v193_v16  ;;  %v194_v24 = vld [vmem:[%s855_s26 + $0x18] sm:$0xff]  ;;  %v195_v32 = vld [vmem:[%s855_s26 + $0x20] sm:$0xff]  ;;  %v342_v35 = vld [vmem:[%s985_s2 + $0x30] sm:$0xff] }
  0x12   : > { %667 = vmatprep.subr.mxu0 %v348_v3  ;;  %708 = vmatprep.subr.mxu1 %v348_v3  ;;  %v210_v25 = vld [vmem:[%s860_s29 + $0x18] sm:$0xff]  ;;  %v211_v33 = vld [vmem:[%s860_s29 + $0x20] sm:$0xff]  ;;  %v341_v39 = vld [vmem:[%s985_s2 + $0x28] sm:$0xff] }
  0x13   : > { %668 = vmatpush3.msra.mxu0 %v348_v3  ;;  %724 = vmatpush3.msra.mxu1 %v348_v3  ;;  %v747_v19 = vpack.i.bf16 %v288_v10, %v223_v9  ;;  %v749_v21 = vpack.i.bf16 %v289_v15, %v224_v14  ;;  %v615_v26 = vld [vmem:[%s860_s29 + $0x98] sm:$0xff]  ;;  %v751_v28 = vpack.i.bf16 %v290_v23, %v225_v22  ;;  %v616_v34 = vld [vmem:[%s860_s29 + $0xa0] sm:$0xff]  ;;  %v196_v40 = vld [vmem:[%s855_s26 + $0x28] sm:$0xff] }
  0x14   : > { %669 = vmatprep.subr.mxu0 %v347_v4  ;;  %709 = vmatprep.subr.mxu1 %v347_v4  ;;  %v226_v29 = vmul.f32 %v210_v25, %v194_v24  ;;  %v291_v30 = vmul.f32 %v615_v26, %v194_v24  ;;  %v227_v37 = vmul.f32 %v211_v33, %v195_v32  ;;  %v212_v41 = vld [vmem:[%s860_s29 + $0x28] sm:$0xff]  ;;  %v340_v43 = vld [vmem:[%s985_s2 + $0x20] sm:$0xff]  ;;  %v339_v47 = vld [vmem:[%s985_s2 + $0x18] sm:$0xff] }
  0x15   : > { %670 = vmatpush3.msra.mxu0 %v347_v4  ;;  %725 = vmatpush3.msra.mxu1 %v347_v4  ;;  %v292_v38 = vmul.f32 %v616_v34, %v195_v32  ;;  %v617_v42 = vld [vmem:[%s860_s29 + $0xa8] sm:$0xff]  ;;  %v228_v45 = vmul.f32 %v212_v41, %v196_v40  ;;  %v197_v48 = vld [vmem:[%s855_s26 + $0x30] sm:$0xff]  ;;  %v198_v55 = vld [vmem:[%s855_s26 + $0x38] sm:$0xff] }
  0x16   : > { %748 = vxpose.xlu0.b32.start [1/16] (narrow) %v747_v19, 32  ;;  %671 = vmatprep.subr.mxu0 %v346_v8  ;;  %v753_v36 = vpack.i.bf16 %v291_v30, %v226_v29  ;;  %v293_v46 = vmul.f32 %v617_v42, %v196_v40  ;;  %v213_v49 = vld [vmem:[%s860_s29 + $0x30] sm:$0xff]  ;;  %v214_v56 = vld [vmem:[%s860_s29 + $0x38] sm:$0xff]  ;;  %v337_v58 = vld [vmem:[%s985_s2 + $0x8] sm:$0xff] }
  0x17   : > { %710 = vmatprep.subr.mxu1 %v346_v8  ;;  %672 = vmatpush3.msra.mxu0 %v346_v8  ;;  %v755_v44 = vpack.i.bf16 %v292_v38, %v227_v37  ;;  %v618_v50 = vld [vmem:[%s860_s29 + $0xb0] sm:$0xff]  ;;  %v229_v53 = vmul.f32 %v213_v49, %v197_v48  ;;  %v619_v57 = vld [vmem:[%s860_s29 + $0xb8] sm:$0xff]  ;;  %v230_v60 = vmul.f32 %v214_v56, %v198_v55  ;;  %v336_v62 = vld [vmem:[%s985_s2] sm:$0xff] }
  0x18   : > { %726 = vmatpush3.msra.mxu1 %v346_v8  ;;  %673 = vmatprep.subr.mxu0 %v345_v20  ;;  %v338_v51 = vld [vmem:[%s985_s2 + $0x10] sm:$0xff]  ;;  %v757_v52 = vpack.i.bf16 %v293_v46, %v228_v45  ;;  %v294_v54 = vmul.f32 %v618_v50, %v197_v48  ;;  %v295_v61 = vmul.f32 %v619_v57, %v198_v55  ;;  %v199_v63 = vld [vmem:[%s855_s26 + $0x40] sm:$0xff]  ;;  %v200_v5 = vld [vmem:[%s855_s26 + $0x48] sm:$0xff] }
  0x19   : > { %711 = vmatprep.subr.mxu1 %v345_v20  ;;  %674 = vmatpush3.msra.mxu0 %v345_v20  ;;  %v215_v0 = vld [vmem:[%s860_s29 + $0x40] sm:$0xff]  ;;  %v216_v6 = vld [vmem:[%s860_s29 + $0x48] sm:$0xff]  ;;  %v201_v11 = vld [vmem:[%s855_s26 + $0x50] sm:$0xff] }
  0x1a   : > { %750 = vxpose.xlu0.b32.cont [2/16] (narrow) %v749_v21, 32  ;;  %727 = vmatpush3.msra.mxu1 %v345_v20  ;;  %v759_v59 = vpack.i.bf16 %v294_v54, %v229_v53  ;;  %v620_v1 = vld [vmem:[%s860_s29 + $0xc0] sm:$0xff]  ;;  %v761_v2 = vpack.i.bf16 %v295_v61, %v230_v60  ;;  %v231_v3 = vmul.f32 %v215_v0, %v199_v63  ;;  %v621_v7 = vld [vmem:[%s860_s29 + $0xc8] sm:$0xff]  ;;  %v217_v12 = vld [vmem:[%s860_s29 + $0x50] sm:$0xff] }
  0x1b   : > { %675 = vmatprep.subr.mxu0 %v344_v27  ;;  %712 = vmatprep.subr.mxu1 %v344_v27  ;;  %v296_v4 = vmul.f32 %v620_v1, %v199_v63  ;;  %v232_v9 = vmul.f32 %v216_v6, %v200_v5  ;;  %v297_v10 = vmul.f32 %v621_v7, %v200_v5  ;;  %v622_v13 = vld [vmem:[%s860_s29 + $0xd0] sm:$0xff]  ;;  %v202_v17 = vld [vmem:[%s855_s26 + $0x58] sm:$0xff]  ;;  %v203_v23 = vld [vmem:[%s855_s26 + $0x60] sm:$0xff] }
  0x1c   : > { %676 = vmatpush3.msra.mxu0 %v344_v27  ;;  %728 = vmatpush3.msra.mxu1 %v344_v27  ;;  %v233_v15 = vmul.f32 %v217_v12, %v201_v11  ;;  %v298_v16 = vmul.f32 %v622_v13, %v201_v11  ;;  %v218_v18 = vld [vmem:[%s860_s29 + $0x58] sm:$0xff]  ;;  %v219_v24 = vld [vmem:[%s860_s29 + $0x60] sm:$0xff]  ;;  %v204_v29 = vld [vmem:[%s855_s26 + $0x68] sm:$0xff] }
  0x1d   : > { %677 = vmatprep.subr.mxu0 %v343_v31  ;;  %713 = vmatprep.subr.mxu1 %v343_v31  ;;  %v763_v8 = vpack.i.bf16 %v296_v4, %v231_v3  ;;  %v765_v14 = vpack.i.bf16 %v297_v10, %v232_v9  ;;  %v623_v19 = vld [vmem:[%s860_s29 + $0xd8] sm:$0xff]  ;;  %v234_v21 = vmul.f32 %v218_v18, %v202_v17  ;;  %v624_v25 = vld [vmem:[%s860_s29 + $0xe0] sm:$0xff]  ;;  %v220_v30 = vld [vmem:[%s860_s29 + $0x68] sm:$0xff] }
  0x1e   : > { %752 = vxpose.xlu0.b32.cont [3/16] (narrow) %v751_v28, 32  ;;  %678 = vmatpush3.msra.mxu0 %v343_v31  ;;  %v767_v20 = vpack.i.bf16 %v298_v16, %v233_v15  ;;  %v299_v22 = vmul.f32 %v623_v19, %v202_v17  ;;  %v235_v27 = vmul.f32 %v219_v24, %v203_v23  ;;  %v626_v37 = vld [vmem:[%s860_s29 + $0xf0] sm:$0xff]  ;;  %v206_v41 = vld [vmem:[%s855_s26 + $0x78] sm:$0xff] }
  0x1f   : > { %729 = vmatpush3.msra.mxu1 %v343_v31  ;;  %679 = vmatprep.subr.mxu0 %v342_v35  ;;  %v300_v28 = vmul.f32 %v624_v25, %v203_v23  ;;  %v625_v31 = vld [vmem:[%s860_s29 + $0xe8] sm:$0xff]  ;;  %v236_v33 = vmul.f32 %v220_v30, %v204_v29  ;;  %v222_v42 = vld [vmem:[%s860_s29 + $0x78] sm:$0xff] }
  0x20   : > { %714 = vmatprep.subr.mxu1 %v342_v35  ;;  %680 = vmatpush3.msra.mxu0 %v342_v35  ;;  %v769_v26 = vpack.i.bf16 %v299_v22, %v234_v21  ;;  %v301_v34 = vmul.f32 %v625_v31, %v204_v29  ;;  %v238_v45 = vmul.f32 %v222_v42, %v206_v41 }
  0x21   : > { %730 = vmatpush3.msra.mxu1 %v342_v35  ;;  %681 = vmatprep.subr.mxu0 %v341_v39  ;;  %v771_v32 = vpack.i.bf16 %v300_v28, %v235_v27  ;;  %v205_v35 = vld [vmem:[%s855_s26 + $0x70] sm:$0xff]  ;;  %s807_s26 = smov 120  }
  0x22   : > { %754 = vxpose.xlu0.b32.cont [4/16] (narrow) %v753_v36, 32  ;;  %715 = vmatprep.subr.mxu1 %v341_v39  ;;  %v221_v36 = vld [vmem:[%s860_s29 + $0x70] sm:$0xff]  ;;  %v773_v38 = vpack.i.bf16 %v301_v34, %v236_v33  ;;  %v302_v40 = vmul.f32 %v626_v37, %v205_v35 }
  0x23   : > { %682 = vmatpush3.msra.mxu0 %v341_v39  ;;  %731 = vmatpush3.msra.mxu1 %v341_v39  ;;  %v237_v39 = vmul.f32 %v221_v36, %v205_v35 }
  0x24   : > { %683 = vmatprep.subr.mxu0 %v340_v43  ;;  %716 = vmatprep.subr.mxu1 %v340_v43 }
  0x25   : > { %684 = vmatpush3.msra.mxu0 %v340_v43  ;;  %732 = vmatpush3.msra.mxu1 %v340_v43  ;;  %v627_v43 = vld [vmem:[%s860_s29 + $0xf8] sm:$0xff]  ;;  %s737_s29 = smul.u32 80, %s988_s13 }
  0x26   : > { %756 = vxpose.xlu0.b32.cont [5/16] (narrow) %v755_v44, 32  ;;  %685 = vmatprep.subr.mxu0 %v339_v47  ;;  %v775_v44 = vpack.i.bf16 %v302_v40, %v237_v39  ;;  %v303_v46 = vmul.f32 %v627_v43, %v206_v41 }
  0x27   : > { %717 = vmatprep.subr.mxu1 %v339_v47  ;;  %686 = vmatpush3.msra.mxu0 %v339_v47  ;;  %s956_s6 = scalar_lea.vmem %s986_s3, %s737_s29 }
  0x28   : > { %733 = vmatpush3.msra.mxu1 %v339_v47  ;;  %687 = vmatprep.subr.mxu0 %v338_v51  ;;  %v777_v47 = vpack.i.bf16 %v303_v46, %v238_v45 }
  0x29   : > { %718 = vmatprep.subr.mxu1 %v338_v51  ;;  %688 = vmatpush3.msra.mxu0 %v338_v51 }
  0x2a   : > { %758 = vxpose.xlu0.b32.cont [6/16] (narrow) %v757_v52, 32  ;;  %734 = vmatpush3.msra.mxu1 %v338_v51 }
  0x2b   : > { %689 = vmatprep.subr.mxu0 %v337_v58  ;;  %719 = vmatprep.subr.mxu1 %v337_v58 }
  0x2c   : > { %690 = vmatpush3.msra.mxu0 %v337_v58  ;;  %735 = vmatpush3.msra.mxu1 %v337_v58 }
  0x2d   : > { %691 = vmatprep.subr.mxu0 %v336_v62  ;;  %720 = vmatprep.subr.mxu1 %v336_v62 }
  0x2e   : > { %760 = vxpose.xlu0.b32.cont [7/16] (narrow) %v759_v59, 32  ;;  %692 = vmatpush3.msra.mxu0 %v336_v62 }
  0x2f   : > { %736 = vmatpush3.msra.mxu1 %v336_v62 }
  0x32   : > { %762 = vxpose.xlu0.b32.cont [8/16] (narrow) %v761_v2, 32 }
  0x36   : > { %764 = vxpose.xlu0.b32.cont [9/16] (narrow) %v763_v8, 32 }
  0x3a   : > { %766 = vxpose.xlu0.b32.cont [10/16] (narrow) %v765_v14, 32 }
  0x3e   : > { %768 = vxpose.xlu0.b32.cont [11/16] (narrow) %v767_v20, 32 }
  0x42   : > { %770 = vxpose.xlu0.b32.cont [12/16] (narrow) %v769_v26, 32 }
  0x46   : > { %772 = vxpose.xlu0.b32.cont [13/16] (narrow) %v771_v32, 32 }
  0x4a   : > { %774 = vxpose.xlu0.b32.cont [14/16] (narrow) %v773_v38, 32 }
  0x4e   : > { %776 = vxpose.xlu0.b32.cont [15/16] (narrow) %v775_v44, 32 }
  0x52   : > { %778 = vxpose.xlu0.b32.end [16/16] (narrow) %v777_v47, 32 }
  0x92   : > { %v779_v48 = vpop.trf.xlu0 }
  0x93   : > { %v780_v49 = vunpack.i.l.bf16 %v779_v48  ;;  %v783_v50 = vunpack.i.h.bf16 %v779_v48 }
  0x95   : > { %693 = vmatprep.mubr.f32.mxu0 %v780_v49  ;;  %699 = vmatprep.mubr.f32.mxu1 %v783_v50 }
  0x96   : > { %v784_v51 = vpop.trf.xlu0 }
  0x97   : > { %v785_v52 = vunpack.i.l.bf16 %v784_v51  ;;  %v788_v53 = vunpack.i.h.bf16 %v784_v51 }
  0x99   : > { %694 = vmatmul.mubr.f32.vlgmr.msra.gmra.mxu0 %v785_v52  ;;  %700 = vmatmul.mubr.f32.vlgmr.msra.gmra.mxu1 %v788_v53 }
  0x9a   : > { %v789_v54 = vpop.trf.xlu0 }
  0x9b   : > { %v790_v55 = vunpack.i.l.bf16 %v789_v54  ;;  %v793_v56 = vunpack.i.h.bf16 %v789_v54 }
  0x9d   : > { %696 = vmatprep.mubr.f32.mxu0 %v790_v55  ;;  %702 = vmatprep.mubr.f32.mxu1 %v793_v56 }
  0x9e   : > { %v794_v57 = vpop.trf.xlu0 }
  0x9f   : > { %v798_v58 = vunpack.i.h.bf16 %v794_v57  ;;  %v795_v59 = vunpack.i.l.bf16 %v794_v57 }
  0xa1   : > { %697 = vmatmul.mubr.f32.gmra.mxu0 %v795_v59  ;;  %703 = vmatmul.mubr.f32.gmra.mxu1 %v798_v58 }
 0x159   : > { %v695_v60 = vpop.f32.mrf.mxu0  ;;  %v701_v61 = vpop.f32.mrf.mxu1 }
 0x15a   : > { %v463_v2 = vrot.slane %v695_v60, 7  ;;  %v502_v5 = vrot.slane %v701_v61, 7 }
 0x15b   : > { %v418_v62 = vpop.f32.mrf.mxu0  ;;  %v438_v0 = vpop.f32.mrf.mxu1 }
 0x15c   : > { %v462_v63 = vrot.slane %v418_v62, 7  ;;  %v501_v1 = vrot.slane %v438_v0, 7 }
 0x15e   : > { %469 = vrot.lane.b32.xlu1 %v462_v63, %s807_s26  ;;  %v464_v3 = vsel %vm461_vm0, %v462_v63, %v463_v2  ;;  %v503_v6 = vsel %vm461_vm0, %v501_v1, %v502_v5 }
 0x161   : > { %v698_v4 = vpop.f32.mrf.mxu0  ;;  %v704_v10 = vpop.f32.mrf.mxu1 }
 0x162   : > { %508 = vrot.lane.b32.xlu1 %v501_v1, %s807_s26  ;;  %v467_v7 = vrot.slane %v698_v4, 7  ;;  %v506_v15 = vrot.slane %v704_v10, 7 }
 0x163   : > { %v428_v8 = vpop.f32.mrf.mxu0  ;;  %v448_v12 = vpop.f32.mrf.mxu1 }
 0x164   : > { %v465_v9 = vrot.slane %v428_v8, 7  ;;  %v504_v13 = vrot.slane %v448_v12, 7 }
 0x166   : > { %471 = vrot.lane.b32.xlu1 %v464_v3, %s807_s26  ;;  %v466_v11 = vsel %vm461_vm0, %v463_v2, %v465_v9  ;;  %v468_v14 = vsel %vm461_vm0, %v465_v9, %v467_v7  ;;  %v505_v16 = vsel %vm461_vm0, %v502_v5, %v504_v13  ;;  %v507_v17 = vsel %vm461_vm0, %v504_v13, %v506_v15 }
 0x16a   : > { %510 = vrot.lane.b32.xlu1 %v503_v6, %s807_s26 }
 0x16e   : > { %477 = vrot.lane.b32.xlu1 %v467_v7, %s807_s26 }
 0x172   : > { %473 = vrot.lane.b32.xlu1 %v466_v11, %s807_s26 }
 0x176   : > { %475 = vrot.lane.b32.xlu1 %v468_v14, %s807_s26 }
 0x17a   : > { %512 = vrot.lane.b32.xlu1 %v505_v16, %s807_s26 }
 0x17e   : > { %514 = vrot.lane.b32.xlu1 %v507_v17, %s807_s26 }
 0x182   : > { %516 = vrot.lane.b32.xlu1 %v506_v15, %s807_s26 }
 0x1d0   : > { %v470_v18 = vpop.permute.xlu1 %469 }
 0x1d1   : > { %v484_v19 = vsel %vm461_vm0, 0.0, %v470_v18 }
 0x1d2   : > { %v485_v20 = vadd.f32 %v484_v19, %v418_v62 }
 0x1d4   : > { %491 = vst.msk [vmem:[%s956_s6] sm:$0xff] %vm490_vm1, %v485_v20  ;;  %v509_v21 = vpop.permute.xlu1 %508 }
 0x1d5   : > { %v523_v22 = vsel %vm461_vm0, 0.0, %v509_v21 }
 0x1d6   : > { %v524_v23 = vadd.f32 %v523_v22, %v438_v0 }
 0x1d8   : > { %628 = vst.msk [vmem:[%s956_s6 + $0x28] sm:$0xff] %vm490_vm1, %v524_v23  ;;  %v472_v24 = vpop.permute.xlu1 %471 }
 0x1d9   : > { %v486_v25 = vadd.f32 %v695_v60, %v472_v24 }
 0x1db   : > { %492 = vst.msk [vmem:[%s956_s6 + $0x8] sm:$0xff] %vm490_vm1, %v486_v25 }
 0x1dc   : > { %v511_v26 = vpop.permute.xlu1 %510 }
 0x1dd   : > { %v525_v27 = vadd.f32 %v701_v61, %v511_v26 }
 0x1df   : > { %629 = vst.msk [vmem:[%s956_s6 + $0x30] sm:$0xff] %vm490_vm1, %v525_v27 }
 0x1e0   : > { %v478_v28 = vpop.permute.xlu1 %477 }
 0x1e1   : > { %496 = vst.msk [vmem:[%s956_s6 + $0x20] sm:$0x1] %vm495_vm2, %v478_v28 }
 0x1e4   : > { %v474_v29 = vpop.permute.xlu1 %473 }
 0x1e5   : > { %v487_v30 = vadd.f32 %v474_v29, %v428_v8 }
 0x1e7   : > { %493 = vst.msk [vmem:[%s956_s6 + $0x10] sm:$0xff] %vm490_vm1, %v487_v30 }
 0x1e8   : > { %v476_v31 = vpop.permute.xlu1 %475 }
 0x1e9   : > { %v488_v32 = vadd.f32 %v698_v4, %v476_v31 }
 0x1eb   : > { %494 = vst.msk [vmem:[%s956_s6 + $0x18] sm:$0xff] %vm490_vm1, %v488_v32 }
 0x1ec   : > { %v513_v33 = vpop.permute.xlu1 %512 }
 0x1ed   : > { %v526_v34 = vadd.f32 %v513_v33, %v448_v12 }
 0x1ef   : > { %630 = vst.msk [vmem:[%s956_s6 + $0x38] sm:$0xff] %vm490_vm1, %v526_v34 }
 0x1f0   : > { %v515_v35 = vpop.permute.xlu1 %514 }
 0x1f1   : > { %v527_v36 = vadd.f32 %v704_v10, %v515_v35 }
 0x1f3   : > { %631 = vst.msk [vmem:[%s956_s6 + $0x40] sm:$0xff] %vm490_vm1, %v527_v36 }
 0x1f4   : > { %v517_v37 = vpop.permute.xlu1 %516 }
 0x1f5   : > { %632 = vst.msk [vmem:[%s956_s6 + $0x48] sm:$0x1] %vm495_vm2, %v517_v37 }
 0x1f6 PF: > { %s13_s12 = sadd.s32 1, %s805_s12  }
 0x1f7   : > { %p10_p4 = scmp.ge.s32.totalorder %s13_s12, 4  }
 0x1f9   :  { %12 = sbr.rel (!%p10_p4) target bundleno = 1 (0x1), region = 67 }

</bundles_post_ra>
